<compile_context>
chip_gen: v7x
topology: tpu7x:2x2x1
jax: 0.10.0
libtpu: 0.0.40
codegen_flags: <defaults>
</compile_context>

<pallas_src>
import jax
import jax.numpy as jnp
from jax import lax
from jax.experimental import pallas as pl
from jax.experimental.pallas import tpu as pltpu


_UNROLL_MAX = 32            # max coalesced DMAs per row-chunk to fully unroll
_STAGE_BUDGET = 8 << 20     # cap (bytes) for the replicated VMEM staging tile
_INFLIGHT_TARGET = 4 << 20  # keep at least this many outbound bytes in flight


def _num_tensorcores() -> int:
    """Best-effort per-chip TensorCore count (2 on v7x, 1 on v5e/v6e)."""
    try:
        info = pltpu.get_tpu_info()
    except Exception:
        return 1
    for name in ("num_cores", "core_count", "num_tensorcores",
                 "tensorcore_count", "tensorcores_per_chip", "cores_per_chip"):
        val = getattr(info, name, None)
        if isinstance(val, int) and val >= 1:
            return min(val, 2)  # chips have at most 2 TCs; clamp bogus values
    return 1


def _vmem_budget_bytes() -> int:
    """VMEM budget for the staging scratch; safe on every generation."""
    try:
        cap = getattr(pltpu.get_tpu_info(), "vmem_capacity_bytes", None)
    except Exception:
        cap = None
    if not isinstance(cap, int) or cap <= 0:
        cap = 64 << 20  # v7x worst-case physical VMEM per core
    return min(_STAGE_BUDGET, cap // 4)


def pos_embed(tokens: jax.Array, W_pos: jax.Array) -> jax.Array:
    """Equivalent of PosEmbed.forward.

    tokens: int array [batch, seq_len] (values unused, only the shape matters)
    W_pos:  float array [n_ctx, d_model]
    returns float array [batch, seq_len, d_model]
    """
    batch, seq_len = tokens.shape
    n_ctx, d_model = W_pos.shape
    assert seq_len <= n_ctx
    dtype = W_pos.dtype
    itemsize = jnp.dtype(dtype).itemsize
    row = seq_len * d_model                      # flat per-batch slab (contiguous)

    # ---------------- static schedule ----------------
    budget_elems = max(128, _vmem_budget_bytes() // itemsize)

    n_cores = _num_tensorcores()
    n_chunks = n_cores if (n_cores > 1 and batch % n_cores == 0) else 1
    per = batch // n_chunks                      # batches handled per grid step

    if row <= budget_elems:
        rchunk = row                             # stage the whole W_pos[:seq_len]
        Kb = max(1, min(per, budget_elems // row))   # batches per outbound DMA
    else:
        # Even one row-slab would blow the v7x-safe VMEM budget: row-tile it.
        rchunk = (budget_elems // 128) * 128
        Kb = 1
    n_rchunks = -(-row // rchunk)                # 1 unless W_pos slice is huge
    n_full = per // Kb
    tail = per - n_full * Kb
    n_dma = n_full + (1 if tail else 0)          # outbound DMAs per row-chunk

    per_dma_bytes = Kb * rchunk * itemsize
    if n_dma <= 1:
        n_live = 1
    else:
        n_live = int(min(n_dma, 8, max(2, -(-_INFLIGHT_TARGET // per_dma_bytes))))

    def kernel(w_hbm, out_hbm, rep, sems):
        base = pl.program_id(0) * per
        in_sem = sems.at[n_live]                 # dedicated inbound-stage slot

        for rc in range(n_rchunks):              # static unroll; normally 1 pass
            off = rc * rchunk
            rc_len = min(rchunk, row - off)

            # Stage this chunk of W_pos[:seq_len] into rep row 0. Async start,
            # wait placed right before first use (replication / fan-out).
            stage = pltpu.make_async_copy(
                w_hbm.at[pl.ds(0, 1), pl.ds(off, rc_len)],
                rep.at[pl.ds(0, 1), pl.ds(0, rc_len)],
                in_sem)
            stage.start()
            stage.wait()

            if Kb > 1:
                # Replicate across the coalescing dim (cheap sublane broadcast;
                # Kb > 1 implies n_rchunks == 1, so this runs once per step).
                rep[...] = jnp.broadcast_to(rep[pl.ds(0, 1), :], (Kb, rchunk))

            def copy(boff, nb, slot):
                return pltpu.make_async_copy(
                    rep.at[pl.ds(0, nb), pl.ds(0, rc_len)],
                    out_hbm.at[pl.ds(base + boff, nb), pl.ds(off, rc_len)],
                    sems.at[slot])

            if n_dma <= _UNROLL_MAX:
                # Small fan-out: unroll at trace time, round-robin n_live slots.
                jobs = [(j * Kb, Kb) for j in range(n_full)]
                if tail:
                    jobs.append((n_full * Kb, tail))
                for idx, (boff, nb) in enumerate(jobs):
                    slot = idx % n_live
                    if idx >= n_live:
                        pboff, pnb = jobs[idx - n_live]
                        copy(pboff, pnb, slot).wait()   # free slot before reuse
                    copy(boff, nb, slot).start()
                for idx in range(max(0, n_dma - n_live), n_dma):
                    boff, nb = jobs[idx]
                    copy(boff, nb, idx % n_live).wait() # drain remaining DMAs
            else:
                # Large fan-out: steady-state pipeline, no full unroll.
                for i in range(n_live):                 # prologue (n_live <= 8)
                    copy(i * Kb, Kb, i).start()

                @pl.loop(n_live, n_full)
                def _(i):
                    slot = i % n_live
                    copy((i - n_live) * Kb, Kb, slot).wait()
                    copy(i * Kb, Kb, slot).start()

                for k in range(n_live):                 # drain
                    i = n_full - n_live + k
                    copy(i * Kb, Kb, i % n_live).wait()
                if tail:                                # ragged batch tail
                    t = copy(n_full * Kb, tail, 0)
                    t.start()
                    t.wait()

    out_flat = pl.pallas_call(
        kernel,
        out_shape=jax.ShapeDtypeStruct((batch, row), dtype),
        grid_spec=pltpu.PrefetchScalarGridSpec(
            num_scalar_prefetch=0,
            grid=(n_chunks,),
            in_specs=[pl.BlockSpec(memory_space=pl.ANY)],   # raw HBM W_pos (flat)
            out_specs=pl.BlockSpec(memory_space=pl.ANY),    # raw HBM output (flat)
            scratch_shapes=[
                pltpu.VMEM((Kb, rchunk), dtype),            # staged + replicated tile
                pltpu.SemaphoreType.DMA((n_live + 1,)),     # fan-out slots + stage sem
            ],
        ),
        compiler_params=pltpu.CompilerParams(
            dimension_semantics=(
                (pltpu.CORE_PARALLEL,) if n_chunks > 1 else ("arbitrary",)),
            has_side_effects=True,   # output written only via manual DMA
        ),
    )(W_pos.reshape(1, n_ctx * d_model))

    return out_flat.reshape(batch, seq_len, d_model)


if __name__ == "__main__":
    # Small, deterministic config (scaled-down Config: n_ctx=64, d_model=32).
    batch, seq_len = 2, 8
    n_ctx, d_model = 64, 32
    init_range = 0.02

    key = jax.random.PRNGKey(0)
    k_w, k_tok = jax.random.split(key)

    # Deterministic parameter init: normal(std=init_range), matching nn.init.normal_.
    W_pos = init_range * jax.random.normal(k_w, (n_ctx, d_model), dtype=jnp.float32)
    tokens = jax.random.randint(k_tok, (batch, seq_len), 0, 16000, dtype=jnp.int32)

    out = pos_embed(tokens, W_pos)
    out = jax.block_until_ready(out)

    # Reference check: W_pos[:seq_len] broadcast over batch.
    ref = jnp.broadcast_to(W_pos[:seq_len][None, :, :], (batch, seq_len, d_model))
    assert out.shape == (batch, seq_len, d_model)
    assert out.dtype == W_pos.dtype
    assert jnp.allclose(out, ref)

    print("KERNEL_OK")
</pallas_src>

<mosaic_0001>
module attributes {stable_mosaic.version = 11 : i64} {
  func.func @kernel(%arg0: i32, %arg1: memref<1x2048xf32, #tpu.memory_space<any>>, %arg2: memref<2x256xf32, #tpu.memory_space<any>>, %arg3: memref<2x256xf32, #tpu.memory_space<vmem>>, %arg4: memref<2x!tpu.dma_semaphore, #tpu.memory_space<semaphore_mem>>) attributes {dimension_semantics = [#tpu.dimension_semantics<arbitrary>], iteration_bounds = array<i64: 1>, scalar_prefetch = 0 : i64, scratch_operands = 2 : i64, tpu.core_type = #tpu.core_type<tc>, window_params = [{}, {}]} {
    %c2_i32 = arith.constant 2 : i32
    %0 = arith.muli %arg0, %c2_i32 : i32
    %c1_i32 = arith.constant 1 : i32
    %c0_i32 = arith.constant 0 : i32
    %c0_i32_0 = arith.constant 0 : i32
    %1 = tpu.memref_slice %arg1[%c0_i32, %c0_i32_0] : memref<1x2048xf32, #tpu.memory_space<any>> -> memref<1x256xf32, #tpu.memory_space<any>>
    %c0_i32_1 = arith.constant 0 : i32
    %c0_i32_2 = arith.constant 0 : i32
    %2 = tpu.memref_slice %arg3[%c0_i32_1, %c0_i32_2] : memref<2x256xf32, #tpu.memory_space<vmem>> -> memref<1x256xf32, #tpu.memory_space<vmem>>
    %3 = tpu.memref_slice %arg4[%c1_i32] : memref<2x!tpu.dma_semaphore, #tpu.memory_space<semaphore_mem>> -> memref<1x!tpu.dma_semaphore, #tpu.memory_space<semaphore_mem>>
    %4 = tpu.memref_squeeze %3 : memref<1x!tpu.dma_semaphore, #tpu.memory_space<semaphore_mem>> -> memref<!tpu.dma_semaphore, #tpu.memory_space<semaphore_mem>>
    tpu.enqueue_dma source(%1 : memref<1x256xf32, #tpu.memory_space<any>>) target(%2 : memref<1x256xf32, #tpu.memory_space<vmem>>) target_semaphore(%4 : memref<!tpu.dma_semaphore, #tpu.memory_space<semaphore_mem>>)
    %c1_i32_3 = arith.constant 1 : i32
    %c0_i32_4 = arith.constant 0 : i32
    %c0_i32_5 = arith.constant 0 : i32
    %5 = tpu.memref_slice %arg1[%c0_i32_4, %c0_i32_5] : memref<1x2048xf32, #tpu.memory_space<any>> -> memref<1x256xf32, #tpu.memory_space<any>>
    %c0_i32_6 = arith.constant 0 : i32
    %c0_i32_7 = arith.constant 0 : i32
    %6 = tpu.memref_slice %arg3[%c0_i32_6, %c0_i32_7] : memref<2x256xf32, #tpu.memory_space<vmem>> -> memref<1x256xf32, #tpu.memory_space<vmem>>
    %7 = tpu.memref_slice %arg4[%c1_i32_3] : memref<2x!tpu.dma_semaphore, #tpu.memory_space<semaphore_mem>> -> memref<1x!tpu.dma_semaphore, #tpu.memory_space<semaphore_mem>>
    %8 = tpu.memref_squeeze %7 : memref<1x!tpu.dma_semaphore, #tpu.memory_space<semaphore_mem>> -> memref<!tpu.dma_semaphore, #tpu.memory_space<semaphore_mem>>
    tpu.wait_dma2 semaphore(%8 : memref<!tpu.dma_semaphore, #tpu.memory_space<semaphore_mem>>) src(%5 : memref<1x256xf32, #tpu.memory_space<any>>) dst(%6 : memref<1x256xf32, #tpu.memory_space<vmem>>)
    %c0 = arith.constant 0 : index
    %c0_8 = arith.constant 0 : index
    %9 = vector.load %arg3[%c0, %c0_8] : memref<2x256xf32, #tpu.memory_space<vmem>>, vector<1x256xf32>
    %10 = vector.shape_cast %9 : vector<1x256xf32> to vector<1x256xf32>
    %11 = vector.broadcast %10 : vector<1x256xf32> to vector<2x256xf32>
    %c0_9 = arith.constant 0 : index
    %c0_10 = arith.constant 0 : index
    %12 = vector.load %arg3[%c0_9, %c0_10] : memref<2x256xf32, #tpu.memory_space<vmem>>, vector<2x256xf32>
    tpu.vector_store %arg3[%c0_9, %c0_10], %11 {strides = array<i32>} : memref<2x256xf32, #tpu.memory_space<vmem>>, vector<2x256xf32>,
    %c0_i32_11 = arith.constant 0 : i32
    %13 = arith.addi %0, %c0_i32_11 : i32
    %c0_i32_12 = arith.constant 0 : i32
    %c0_i32_13 = arith.constant 0 : i32
    %c0_i32_14 = arith.constant 0 : i32
    %14 = tpu.memref_slice %arg3[%c0_i32_13, %c0_i32_14] : memref<2x256xf32, #tpu.memory_space<vmem>> -> memref<2x256xf32, #tpu.memory_space<vmem>>
    %c0_i32_15 = arith.constant 0 : i32
    %15 = tpu.memref_slice %arg2[%13, %c0_i32_15] : memref<2x256xf32, #tpu.memory_space<any>> -> memref<2x256xf32, #tpu.memory_space<any>>
    %16 = tpu.memref_slice %arg4[%c0_i32_12] : memref<2x!tpu.dma_semaphore, #tpu.memory_space<semaphore_mem>> -> memref<1x!tpu.dma_semaphore, #tpu.memory_space<semaphore_mem>>
    %17 = tpu.memref_squeeze %16 : memref<1x!tpu.dma_semaphore, #tpu.memory_space<semaphore_mem>> -> memref<!tpu.dma_semaphore, #tpu.memory_space<semaphore_mem>>
    tpu.enqueue_dma source(%14 : memref<2x256xf32, #tpu.memory_space<vmem>>) target(%15 : memref<2x256xf32, #tpu.memory_space<any>>) target_semaphore(%17 : memref<!tpu.dma_semaphore, #tpu.memory_space<semaphore_mem>>)
    %c0_i32_16 = arith.constant 0 : i32
    %18 = arith.addi %0, %c0_i32_16 : i32
    %c0_i32_17 = arith.constant 0 : i32
    %c0_i32_18 = arith.constant 0 : i32
    %c0_i32_19 = arith.constant 0 : i32
    %19 = tpu.memref_slice %arg3[%c0_i32_18, %c0_i32_19] : memref<2x256xf32, #tpu.memory_space<vmem>> -> memref<2x256xf32, #tpu.memory_space<vmem>>
    %c0_i32_20 = arith.constant 0 : i32
    %20 = tpu.memref_slice %arg2[%18, %c0_i32_20] : memref<2x256xf32, #tpu.memory_space<any>> -> memref<2x256xf32, #tpu.memory_space<any>>
    %21 = tpu.memref_slice %arg4[%c0_i32_17] : memref<2x!tpu.dma_semaphore, #tpu.memory_space<semaphore_mem>> -> memref<1x!tpu.dma_semaphore, #tpu.memory_space<semaphore_mem>>
    %22 = tpu.memref_squeeze %21 : memref<1x!tpu.dma_semaphore, #tpu.memory_space<semaphore_mem>> -> memref<!tpu.dma_semaphore, #tpu.memory_space<semaphore_mem>>
    tpu.wait_dma2 semaphore(%22 : memref<!tpu.dma_semaphore, #tpu.memory_space<semaphore_mem>>) src(%19 : memref<2x256xf32, #tpu.memory_space<vmem>>) dst(%20 : memref<2x256xf32, #tpu.memory_space<any>>)
    return
  }
}

</mosaic_0001>

<bundles_post_ra>
// kernel: tpu_custom_call.1
= control target key start
LH: loop header
LB: loop body
LE: loop exit
PB: predicated region body
PF: predicated region fallthrough
CT: control target
= control target key end

     0   :  { %s126_s6 = smov [#allocation2]   ;;  %s183_s0 = inlined_call_operand.hbm [shape: f32[1,2048], index: 0, kind: input, shape index: {}]   ;;  %s184_s1 = inlined_call_operand.hbm [shape: f32[2,256], index: 1, kind: output, shape index: {}]  }
   0x1   :  { %s9_s7 = sshll.u32 %s126_s6, 4  ;;  %s78_s10 = scalar_lea.hbm %s183_s0, 32  ;;  %s140_s7 = int_to_ptr.vmem [resolvable:$true] %s9_s7 }
   0x2   :  { %p79_p0 = scmp.ne.s32.totalorder %s183_s0, %s78_s10  ;;  %s80_s15 = scalar_lea.hbm %s183_s0, 256 }
   0x3   :  { %p81_p1 = scmp.lt.u32.totalorder %s80_s15, %s78_s10  ;;  %p82_p2 = scmp.lt.u32.totalorder %s78_s10, %s183_s0 }
   0x5   :  { %p83_p3 = por %p82_p2, %p81_p1 }
   0x7   :  { %p84_p4 = pnand %p83_p3, %p79_p0 }
   0x9   :  { %87 = shalt.err (!%p84_p4)  }
   0xa   :  { %s88_s18 = scalar_lea.vmem %s140_s7, 32  ;;  %s92_s19 = scalar_lea.vmem %s140_s7, 64 }
   0xb   :  { %p89_p5 = scmp.ne.s32.totalorder %s140_s7, %s88_s18  ;;  %p93_p6 = scmp.lt.s32.totalorder %s140_s7, %s140_s7 }
   0xc   :  { %p94_p7 = scmp.lt.s32.totalorder %s92_s19, %s88_s18 }
   0xe   :  { %p95_p8 = por %p94_p7, %p93_p6 }
  0x10   :  { %p96_p9 = pnand %p95_p8, %p89_p5 }
  0x12   :  { %99 = shalt.err (!%p96_p9)  }
  0x13   :  { %s127_s20 = smov 16   ;;  %s128_s21 = smov 32  }
  0x14   :  { %s129_s22 = smov 1  }
  0x15   :  { %12 = dma.hbm_to_vmem [thread:$0]  %s183_s0, 32, %s140_s7, [#allocation3 + $0x1], %s127_s20, %s128_s21, %s129_s22 }
  0x16   :  { %122 = dma.done.wait [#allocation3 + $0x1], 32 }
  0x17   :  { %123 = vsyncadd [#allocation3 + $0x1], 4294967264  ;;  %v18_v0 = vlaneseq  ;;  %v16_v4 = vld [vmem:[#allocation2] ss:$2 sm:$0x3]  ;;  %p101_p10 = scmp.ne.s32.totalorder %s140_s7, %s92_s19  ;;  %p106_p11 = scmp.lt.s32.totalorder %s92_s19, %s92_s19 }
  0x19   :  { %v19_v1 = vshrl.u32 %v18_v0, 7  ;;  %p107_p12 = por %p106_p11, %p93_p6 }
  0x1b   :  { %v20_v2 = vsub.s32 0, %v19_v1  ;;  %v24_v3 = vsub.s32 1, %v19_v1  ;;  %p108_p13 = pnand %p107_p12, %p101_p10 }
  0x1d   :  { %v21_v5 = vrot.slane %v16_v4, %v20_v2  ;;  %v25_v6 = vrot.slane %v16_v4, %v24_v3 }
  0x1f   :  { %v26_v7 = vcombine.low %v21_v5, %v25_v6 }
  0x21   :  { %71 = vst.sshfl [vmem:[#allocation2] sm:$0x33 pattern:$0x76325410] %v26_v7 }
  0x22   :  { %111 = shalt.err (!%p108_p13)  }
  0x23   :  { %s112_s26 = scalar_lea.hbm %s184_s1, 64 }
  0x24   :  { %p113_p0 = scmp.ne.s32.totalorder %s184_s1, %s112_s26  ;;  %p116_p1 = scmp.lt.u32.totalorder %s112_s26, %s184_s1 }
  0x26   :  { %p118_p2 = pnand %p116_p1, %p113_p0 }
  0x28   :  { %121 = shalt.err (!%p118_p2)  }
  0x29   :  { %51 = dma.vmem_to_hbm [thread:$0]  %s140_s7, 64, %s184_s1, [#allocation3] }
  0x2a   :  { %124 = dma.done.wait [#allocation3], 64 }
  0x2b   :  { %125 = vsyncadd [#allocation3], 4294967232 }
  0x2c   :  { %56 = vsyncmov [#allocation3] }
  0x2f   :  { %s57_s4 = vpop.sfrf %56 }
  0x30   :  { %p72_p3 = scmp.ne.s32.totalorder %s57_s4, 0 }
  0x32   :  { %61 = shalt.err (%p72_p3)  }
  0x33   :  { %63 = vsyncmov [#allocation3 + $0x1] }
  0x36   :  { %s64_s5 = vpop.sfrf %63 }
  0x37   :  { %p73_p4 = scmp.ne.s32.totalorder %s64_s5, 0 }
  0x39   :  { %68 = shalt.err (%p73_p4)  }

</bundles_post_ra>
